<compile_context>
chip_gen: v7x
topology: tpu7x:2x2x1
jax: 0.10.0
libtpu: 0.0.40
codegen_flags: <defaults>
</compile_context>

<pallas_src>
import functools

import jax
import jax.numpy as jnp
from jax.experimental import pallas as pl
from jax.experimental.pallas import tpu as pltpu


def pinn_mlp_kernel(t_ref,
                    w1_ref, b1_ref,
                    w2_ref, b2_ref,
                    w3_ref, b3_ref,
                    w4_ref, b4_ref,
                    o_ref,
                    *, matmul_dtype):
    # Feature-major layout: x is (1, TN); weights are PyTorch-style (out, in);
    # biases are (out, 1) columns broadcasting across the lane (batch) axis.
    x = t_ref[...]                                                        # (1, TN)

    # Layer 1: rank-1 "matmul" done as a VPU broadcast multiply (skip the MXU).
    h = jnp.tanh(w1_ref[...] * x + b1_ref[...])                           # (64, TN)

    # Layers 2-3: MXU matmuls with the batch on the lane axis (lane-dense),
    # f32 accumulation; tanh on the EUP, bias-add on the VPU (both f32).
    h = jnp.tanh(
        jnp.dot(w2_ref[...], h.astype(matmul_dtype),
                preferred_element_type=jnp.float32) + b2_ref[...])        # (64, TN)
    h = jnp.tanh(
        jnp.dot(w3_ref[...], h.astype(matmul_dtype),
                preferred_element_type=jnp.float32) + b3_ref[...])        # (64, TN)

    # Output layer (padded to 8 rows): (8, 64) @ (64, TN) -> (8, TN).
    # Full-sublane, lane-dense, unmasked store; pad rows sliced off outside.
    y = jnp.dot(w4_ref[...], h.astype(matmul_dtype),
                preferred_element_type=jnp.float32) + b4_ref[...]
    o_ref[...] = y.astype(o_ref.dtype)                                    # (8, TN)


def _choose_tile(n, tile_n):
    """Snap tile_n to a multiple of 256 and make sure the grid has >=2 steps
    for batches larger than one tile (v7x megacore sharding), without
    over-padding tiny batches."""
    tile_n = max(256, (tile_n // 256) * 256)
    # Smallest 256-multiple that covers half the batch -> at least 2 tiles.
    half_cover = -(-(-(-n // 2)) // 256) * 256   # round_up(ceil(n/2), 256)
    return max(256, min(tile_n, half_cover))


def pinn_forward(t, params, *, tile_n=4096, use_bf16_matmul=False,
                 feature_major=False):
    """Forward pass of the PINN MLP.

    t: (N, 1) float32 time samples (row-major, like PyTorch).
    params: dict with PyTorch-layout weights w{1..4}: (out, in), b{1..4}: (out, 1).
    Returns: (N, 3) float32 by default, or (3, N) if feature_major=True (saves
    the post-kernel transpose when the consumer can take feature-major).
    use_bf16_matmul: opt-in bf16 MXU operands (f32 accumulation) for v6e/v7x;
    keep False on v5e and whenever the 1e-5 reference tolerance must hold.
    """
    N = t.shape[0]
    tile_n = _choose_tile(N, tile_n)
    n_tiles = pl.cdiv(N, tile_n)
    n_pad = n_tiles * tile_n

    # Batch-on-lanes: (N, 1) -> (1, N_pad), zero-padded to a tile multiple.
    x = jnp.transpose(t.astype(jnp.float32))                              # (1, N)
    if n_pad != N:
        x = jnp.pad(x, ((0, 0), (0, n_pad - N)))

    matmul_dtype = jnp.bfloat16 if use_bf16_matmul else jnp.float32

    w1, b1 = params["w1"], params["b1"]                     # (64, 1), (64, 1)
    w2 = params["w2"].astype(matmul_dtype)                  # (64, 64)
    b2 = params["b2"]                                       # (64, 1)
    w3 = params["w3"].astype(matmul_dtype)                  # (64, 64)
    b3 = params["b3"]                                       # (64, 1)
    # Pad the output layer 3 -> 8 rows: full 8-sublane vreg, unmasked stores.
    w4 = jnp.pad(params["w4"], ((0, 5), (0, 0))).astype(matmul_dtype)  # (8, 64)
    b4 = jnp.pad(params["b4"], ((0, 5), (0, 0)))                        # (8, 1)

    # Explicit scoped-VMEM limit only when a very large tile could exceed the
    # v5e 16 MiB default (tile_n default keeps us far below it everywhere).
    act_bytes = 4 * 64 * tile_n * 4          # ~4 live (64, tile_n) f32 slabs
    io_bytes = 2 * (1 + 8) * tile_n * 4      # double-buffered in/out tiles
    est_vmem = act_bytes + io_bytes + 256 * 1024
    vmem_limit = None
    if est_vmem > 12 * 1024 * 1024:
        vmem_limit = min(2 * est_vmem, 56 * 1024 * 1024)

    full = lambda a: pl.BlockSpec(a.shape, lambda i: (0, 0))

    out = pl.pallas_call(
        functools.partial(pinn_mlp_kernel, matmul_dtype=matmul_dtype),
        out_shape=jax.ShapeDtypeStruct((8, n_pad), jnp.float32),
        grid_spec=pltpu.PrefetchScalarGridSpec(
            num_scalar_prefetch=0,
            grid=(n_tiles,),
            in_specs=[
                pl.BlockSpec((1, tile_n), lambda i: (0, i)),   # t tile (lane-dense)
                full(w1), full(b1),
                full(w2), full(b2),
                full(w3), full(b3),
                full(w4), full(b4),
            ],
            out_specs=pl.BlockSpec((8, tile_n), lambda i: (0, i)),
        ),
        compiler_params=pltpu.CompilerParams(
            dimension_semantics=("parallel",),
            vmem_limit_bytes=vmem_limit),
    )(x, w1, b1, w2, b2, w3, b3, w4, b4)

    # Drop the padded output rows / batch columns.
    out = out[:3, :N]                                                      # (3, N)
    if feature_major:
        return out
    # PyTorch-facing (N, 3) layout.
    return jnp.transpose(out)


def init_params(key):
    """Deterministic init matching PyTorch nn.Linear default U(-1/sqrt(fan_in), +).

    Weights are stored PyTorch-style (out_features, in_features); biases as
    (out_features, 1) columns so they broadcast over the lane (batch) axis.
    """
    dims = [(1, 64), (64, 64), (64, 64), (64, 3)]
    params = {}
    for li, (fan_in, fan_out) in enumerate(dims, start=1):
        key, kw, kb = jax.random.split(key, 3)
        bound = 1.0 / (fan_in ** 0.5)
        params[f"w{li}"] = jax.random.uniform(
            kw, (fan_out, fan_in), jnp.float32, minval=-bound, maxval=bound)
        params[f"b{li}"] = jax.random.uniform(
            kb, (fan_out, 1), jnp.float32, minval=-bound, maxval=bound)
    return params


def pinn_reference(t, params):
    """Pure-JAX reference mirroring the PyTorch module (row-major)."""
    h = jnp.tanh(t @ params["w1"].T + params["b1"].T)
    h = jnp.tanh(h @ params["w2"].T + params["b2"].T)
    h = jnp.tanh(h @ params["w3"].T + params["b3"].T)
    return h @ params["w4"].T + params["b4"].T


if __name__ == "__main__":
    key = jax.random.PRNGKey(0)
    kp, kt = jax.random.split(key)

    params = init_params(kp)
    # Small test shapes; N is deliberately NOT a multiple of the tile so the
    # padding path and the >=2-tile (megacore) path are both exercised.
    # Production PINN batches (10K-1M collocation points) use tile_n=4096+.
    N = 300
    t = jax.random.uniform(kt, (N, 1), jnp.float32)   # time samples

    y = pinn_forward(t, params)
    y = jax.block_until_ready(y)

    y_ref = pinn_reference(t, params)
    assert y.shape == (N, 3)
    assert jnp.allclose(y, y_ref, atol=1e-5, rtol=1e-5), "mismatch vs reference"

    # TODO(synk): on v6e/v7x, benchmark use_bf16_matmul=True (f32 accumulation)
    # and an in-kernel 2-way lane sub-block split to overlap MXU and EUP; both
    # need a loosened tolerance / bundle dump to validate, so kept opt-in.

    print("KERNEL_OK")
</pallas_src>

<mosaic_0001>
module attributes {stable_mosaic.version = 11 : i64} {
  func.func @pinn_mlp_kernel(%arg0: i32, %arg1: memref<1x256xf32, #tpu.memory_space<vmem>>, %arg2: memref<64x1xf32, #tpu.memory_space<vmem>>, %arg3: memref<64x1xf32, #tpu.memory_space<vmem>>, %arg4: memref<64x64xf32, #tpu.memory_space<vmem>>, %arg5: memref<64x1xf32, #tpu.memory_space<vmem>>, %arg6: memref<64x64xf32, #tpu.memory_space<vmem>>, %arg7: memref<64x1xf32, #tpu.memory_space<vmem>>, %arg8: memref<8x64xf32, #tpu.memory_space<vmem>>, %arg9: memref<8x1xf32, #tpu.memory_space<vmem>>, %arg10: memref<8x256xf32, #tpu.memory_space<vmem>>) attributes {dimension_semantics = [#tpu.dimension_semantics<parallel>], iteration_bounds = array<i64: 2>, scalar_prefetch = 0 : i64, scratch_operands = 0 : i64, tpu.core_type = #tpu.core_type<tc>, window_params = [{transform_indices = @transform_0, window_bounds = array<i64: 1, 256>}, {pipeline_mode = #tpu.pipeline_mode<synchronous>, transform_indices = @transform_1, window_bounds = array<i64: 64, 1>}, {pipeline_mode = #tpu.pipeline_mode<synchronous>, transform_indices = @transform_2, window_bounds = array<i64: 64, 1>}, {pipeline_mode = #tpu.pipeline_mode<synchronous>, transform_indices = @transform_3, window_bounds = array<i64: 64, 64>}, {pipeline_mode = #tpu.pipeline_mode<synchronous>, transform_indices = @transform_4, window_bounds = array<i64: 64, 1>}, {pipeline_mode = #tpu.pipeline_mode<synchronous>, transform_indices = @transform_5, window_bounds = array<i64: 64, 64>}, {pipeline_mode = #tpu.pipeline_mode<synchronous>, transform_indices = @transform_6, window_bounds = array<i64: 64, 1>}, {pipeline_mode = #tpu.pipeline_mode<synchronous>, transform_indices = @transform_7, window_bounds = array<i64: 8, 64>}, {pipeline_mode = #tpu.pipeline_mode<synchronous>, transform_indices = @transform_8, window_bounds = array<i64: 8, 1>}, {transform_indices = @transform_9, window_bounds = array<i64: 8, 256>}]} {
    %c0 = arith.constant 0 : index
    %c0_0 = arith.constant 0 : index
    %0 = vector.load %arg1[%c0, %c0_0] : memref<1x256xf32, #tpu.memory_space<vmem>>, vector<1x256xf32>
    %c0_1 = arith.constant 0 : index
    %c0_2 = arith.constant 0 : index
    %1 = vector.load %arg2[%c0_1, %c0_2] : memref<64x1xf32, #tpu.memory_space<vmem>>, vector<64x1xf32>
    %2 = vector.broadcast %1 : vector<64x1xf32> to vector<64x256xf32>
    %3 = vector.broadcast %0 : vector<1x256xf32> to vector<64x256xf32>
    %4 = arith.mulf %2, %3 : vector<64x256xf32>
    %c0_3 = arith.constant 0 : index
    %c0_4 = arith.constant 0 : index
    %5 = vector.load %arg3[%c0_3, %c0_4] : memref<64x1xf32, #tpu.memory_space<vmem>>, vector<64x1xf32>
    %6 = vector.broadcast %5 : vector<64x1xf32> to vector<64x256xf32>
    %7 = arith.addf %4, %6 : vector<64x256xf32>
    %8 = math.tanh %7 : vector<64x256xf32>
    %c0_5 = arith.constant 0 : index
    %c0_6 = arith.constant 0 : index
    %9 = vector.load %arg4[%c0_5, %c0_6] : memref<64x64xf32, #tpu.memory_space<vmem>>, vector<64x64xf32>
    %cst = arith.constant dense<0.000000e+00> : vector<64x256xf32>
    %10 = tpu.matmul %9, %8, %cst {dimension_numbers = #tpu.dot_dimension_numbers<[1], [0], [0], [1], [0, 0, 1, 1], [], []>} : vector<64x64xf32>, vector<64x256xf32>, vector<64x256xf32> -> vector<64x256xf32>
    %c0_7 = arith.constant 0 : index
    %c0_8 = arith.constant 0 : index
    %11 = vector.load %arg5[%c0_7, %c0_8] : memref<64x1xf32, #tpu.memory_space<vmem>>, vector<64x1xf32>
    %12 = vector.broadcast %11 : vector<64x1xf32> to vector<64x256xf32>
    %13 = arith.addf %10, %12 : vector<64x256xf32>
    %14 = math.tanh %13 : vector<64x256xf32>
    %c0_9 = arith.constant 0 : index
    %c0_10 = arith.constant 0 : index
    %15 = vector.load %arg6[%c0_9, %c0_10] : memref<64x64xf32, #tpu.memory_space<vmem>>, vector<64x64xf32>
    %cst_11 = arith.constant dense<0.000000e+00> : vector<64x256xf32>
    %16 = tpu.matmul %15, %14, %cst_11 {dimension_numbers = #tpu.dot_dimension_numbers<[1], [0], [0], [1], [0, 0, 1, 1], [], []>} : vector<64x64xf32>, vector<64x256xf32>, vector<64x256xf32> -> vector<64x256xf32>
    %c0_12 = arith.constant 0 : index
    %c0_13 = arith.constant 0 : index
    %17 = vector.load %arg7[%c0_12, %c0_13] : memref<64x1xf32, #tpu.memory_space<vmem>>, vector<64x1xf32>
    %18 = vector.broadcast %17 : vector<64x1xf32> to vector<64x256xf32>
    %19 = arith.addf %16, %18 : vector<64x256xf32>
    %20 = math.tanh %19 : vector<64x256xf32>
    %c0_14 = arith.constant 0 : index
    %c0_15 = arith.constant 0 : index
    %21 = vector.load %arg8[%c0_14, %c0_15] : memref<8x64xf32, #tpu.memory_space<vmem>>, vector<8x64xf32>
    %cst_16 = arith.constant dense<0.000000e+00> : vector<8x256xf32>
    %22 = tpu.matmul %21, %20, %cst_16 {dimension_numbers = #tpu.dot_dimension_numbers<[1], [0], [0], [1], [0, 0, 1, 1], [], []>} : vector<8x64xf32>, vector<64x256xf32>, vector<8x256xf32> -> vector<8x256xf32>
    %c0_17 = arith.constant 0 : index
    %c0_18 = arith.constant 0 : index
    %23 = vector.load %arg9[%c0_17, %c0_18] : memref<8x1xf32, #tpu.memory_space<vmem>>, vector<8x1xf32>
    %24 = vector.broadcast %23 : vector<8x1xf32> to vector<8x256xf32>
    %25 = arith.addf %22, %24 : vector<8x256xf32>
    %c0_19 = arith.constant 0 : index
    %c0_20 = arith.constant 0 : index
    %26 = vector.load %arg10[%c0_19, %c0_20] : memref<8x256xf32, #tpu.memory_space<vmem>>, vector<8x256xf32>
    tpu.vector_store %arg10[%c0_19, %c0_20], %25 {strides = array<i32>} : memref<8x256xf32, #tpu.memory_space<vmem>>, vector<8x256xf32>,
    return
  }
  func.func @transform_0(%arg0: i32) -> (i32, i32) {
    %c0_i32 = arith.constant 0 : i32
    %c0_i32_0 = arith.constant 0 : i32
    return %c0_i32, %arg0 : i32, i32
  }
  func.func @transform_1(%arg0: i32) -> (i32, i32) {
    %c0_i32 = arith.constant 0 : i32
    %c0_i32_0 = arith.constant 0 : i32
    %c0_i32_1 = arith.constant 0 : i32
    return %c0_i32, %c0_i32_0 : i32, i32
  }
  func.func @transform_2(%arg0: i32) -> (i32, i32) {
    %c0_i32 = arith.constant 0 : i32
    %c0_i32_0 = arith.constant 0 : i32
    %c0_i32_1 = arith.constant 0 : i32
    return %c0_i32, %c0_i32_0 : i32, i32
  }
  func.func @transform_3(%arg0: i32) -> (i32, i32) {
    %c0_i32 = arith.constant 0 : i32
    %c0_i32_0 = arith.constant 0 : i32
    %c0_i32_1 = arith.constant 0 : i32
    return %c0_i32, %c0_i32_0 : i32, i32
  }
  func.func @transform_4(%arg0: i32) -> (i32, i32) {
    %c0_i32 = arith.constant 0 : i32
    %c0_i32_0 = arith.constant 0 : i32
    %c0_i32_1 = arith.constant 0 : i32
    return %c0_i32, %c0_i32_0 : i32, i32
  }
  func.func @transform_5(%arg0: i32) -> (i32, i32) {
    %c0_i32 = arith.constant 0 : i32
    %c0_i32_0 = arith.constant 0 : i32
    %c0_i32_1 = arith.constant 0 : i32
    return %c0_i32, %c0_i32_0 : i32, i32
  }
  func.func @transform_6(%arg0: i32) -> (i32, i32) {
    %c0_i32 = arith.constant 0 : i32
    %c0_i32_0 = arith.constant 0 : i32
    %c0_i32_1 = arith.constant 0 : i32
    return %c0_i32, %c0_i32_0 : i32, i32
  }
  func.func @transform_7(%arg0: i32) -> (i32, i32) {
    %c0_i32 = arith.constant 0 : i32
    %c0_i32_0 = arith.constant 0 : i32
    %c0_i32_1 = arith.constant 0 : i32
    return %c0_i32, %c0_i32_0 : i32, i32
  }
  func.func @transform_8(%arg0: i32) -> (i32, i32) {
    %c0_i32 = arith.constant 0 : i32
    %c0_i32_0 = arith.constant 0 : i32
    %c0_i32_1 = arith.constant 0 : i32
    return %c0_i32, %c0_i32_0 : i32, i32
  }
  func.func @transform_9(%arg0: i32) -> (i32, i32) {
    %c0_i32 = arith.constant 0 : i32
    %c0_i32_0 = arith.constant 0 : i32
    return %c0_i32, %arg0 : i32, i32
  }
}

</mosaic_0001>

<bundles_post_ra>
// kernel: tpu_custom_call.1
= control target key start
LH: loop header
LB: loop body
LE: loop exit
PB: predicated region body
PF: predicated region fallthrough
CT: control target
= control target key end

     0   :  { %14 = vsyncpa [#allocation3], 0  ;;  %s1696_s0 = inlined_call_operand.vmem [shape: f32[1,512], index: 0, kind: input, shape index: {}]   ;;  %s1697_s1 = inlined_call_operand.vmem [shape: f32[64,1], index: 1, kind: input, shape index: {}]   ;;  %s1698_s2 = inlined_call_operand.vmem [shape: f32[64,1], index: 2, kind: input, shape index: {}]   ;;  %s1699_s3 = inlined_call_operand.vmem [shape: f32[64,64], index: 3, kind: input, shape index: {}]   ;;  %s1700_s4 = inlined_call_operand.vmem [shape: f32[64,1], index: 4, kind: input, shape index: {}]   ;;  %s1701_s5 = inlined_call_operand.vmem [shape: f32[64,64], index: 5, kind: input, shape index: {}]   ;;  %s1702_s6 = inlined_call_operand.vmem [shape: f32[64,1], index: 6, kind: input, shape index: {}]   ;;  %s1703_s7 = inlined_call_operand.vmem [shape: f32[8,64], index: 7, kind: input, shape index: {}]   ;;  %s1704_s8 = inlined_call_operand.vmem [shape: f32[8,1], index: 8, kind: input, shape index: {}]   ;;  %s1705_s9 = inlined_call_operand.hbm [shape: f32[8,512], index: 9, kind: output, shape index: {}]  }
   0x1   :  { %16 = vsyncpa [#allocation3 + $0x1], 0  ;;  %s1393_s30 = smov 0   ;;  %s1395_s10 = smov 0  }
   0x2   :  { %s1397_s11 = smov 0   ;;  %s1399_s12 = smov 0  }
   0x3 LB: > { %s1414_s13 = sadd.s32 4294967295, %s1338_s12   ;;  %s1060_s14 = sadd.s32 4294967294, %s1338_s12   ;;  %s1338_s12 = sphi %s1399_s12, %s1711_s12   ;;  %s1334_s11 = sphi %s1397_s11, %s1710_s11   ;;  %s1330_s10 = sphi %s1395_s10, %s1709_s10   ;;  %s1326_s30 = sphi %s1393_s30, %s1708_s30  }
   0x4   : > { %s1418_s15 = sadd.s32 1, %s1338_s12   ;;  %s223_s16 = sadd.s32 1, %s1334_s11 }
   0x5   : > { %s220_s17 = ssub.s32 %s1338_s12, %s1418_s15  ;;  %p233_p0 = scmp.ne.s32.totalorder %s1334_s11, %s1330_s10 }
   0x6   : > { %p221_p1 = scmp.eq.s32.totalorder %s220_s17, 0  ;;  %p234_p2 = scmp.eq.s32.totalorder %s1414_s13, 1 }
   0x7   : > { %p239_p3 = scmp.ne.s32.totalorder %s1330_s10, %s1326_s30  ;;  %p240_p4 = scmp.eq.s32.totalorder %s1060_s14, 1 }
   0x8   : > { %s1429_s18 = scalar_select %p221_p1, %s1334_s11, %s223_s16  }
   0x9   : > { %p1431_p5 = por %p234_p2, %p233_p0  ;;  %p1435_p6 = por %p240_p4, %p239_p3 }
   0xa   : > { %p1063_p7 = scmp.ge.s32.totalorder %s1338_s12, 1  ;;  %p290_p8 = scmp.lt.s32.totalorder %s1338_s12, 3 }
   0xc   : > { %p291_p9 = pnand %p1063_p7, %p290_p8 }
   0xd   : > { %v407_v0 = vld [vmem:[%s1698_s2] sm:$0xff] (!%p291_p9)  ;;  %v1340_v2 = vmov (!%p291_p9), 0   ;;  %v408_v3 = vld [vmem:[%s1698_s2 + $0x8] sm:$0xff] (!%p291_p9)  ;;  %v335_v5 = vld [vmem:[%s1697_s1 + $0x18] sm:$0xff] (!%p291_p9)  ;;  %v1341_v29 = vmov (!%p291_p9), 0.0   ;;  %s1065_s27 = sshll.u32 (!%p291_p9), %s1414_s13, 1  ;;  %v381_v35 = vlaneseq (!%p291_p9) }
   0xe   : > { %294 = sbr.rel (%p291_p9) target bundleno = 942 (0x3ae), region = 56  ;;  %v332_v1 = vld [vmem:[%s1697_s1] sm:$0xff] (!%p291_p9)  ;;  %1179 = vset.pattern.permute.xlu1 (!%p291_p9), %v1340_v2  ;;  %1178 = vset.pattern.permute.xlu0 (!%p291_p9), %v1340_v2  ;;  %v333_v4 = vld [vmem:[%s1697_s1 + $0x8] sm:$0xff] (!%p291_p9)  ;;  %v334_v6 = vld [vmem:[%s1697_s1 + $0x10] sm:$0xff] (!%p291_p9)  ;;  %p326_p10 = scmp.lt.s32.totalorder (!%p291_p9), %s1065_s27, 3  ;;  %vm543_vm0 = vcmask (!%p291_p9), 523264  }
   0xf   : > { %417 = vperm.xlu1 (!%p291_p9), %1179, %v407_v0   ;;  %342 = vperm.xlu0 (!%p291_p9), %1178, %v332_v1   ;;  %v410_v7 = vld [vmem:[%s1698_s2 + $0x18] sm:$0xff] (!%p291_p9)  ;;  %v409_v8 = vld [vmem:[%s1698_s2 + $0x10] sm:$0xff] (!%p291_p9)  ;;  %v337_v9 = vld [vmem:[%s1697_s1 + $0x28] sm:$0xff] (!%p291_p9)  ;;  %v382_v36 = vshrl.u32 (!%p291_p9), %v381_v35, 7  ;;  %s322_s29 = sand.u32 (!%p291_p9), 1, %s1330_s10   ;;  %s1088_s16 = sshll.u32 (!%p291_p9), %s1414_s13, 8 }
  0x10   : > { %v336_v10 = vld [vmem:[%s1697_s1 + $0x20] sm:$0xff] (!%p291_p9)  ;;  %v412_v11 = vld [vmem:[%s1698_s2 + $0x28] sm:$0xff] (!%p291_p9)  ;;  %v339_v13 = vld [vmem:[%s1697_s1 + $0x38] sm:$0xff] (!%p291_p9)  ;;  %632 = vmatprep.mubr.f32.mxu0 (!%p291_p9), %v1341_v29  ;;  %841 = vmatprep.mubr.f32.mxu1 (!%p291_p9), %v1341_v29  ;;  %s1654_s24 = scalar_lea.hbm (!%p291_p9), %s1705_s9, %s1088_s16  ;;  %s990_s13 = scalar_lea.sflag (!%p291_p9), [#allocation3], %s322_s29 }
  0x11   : > { %v411_v12 = vld [vmem:[%s1698_s2 + $0x20] sm:$0xff] (!%p291_p9)  ;;  %v338_v14 = vld [vmem:[%s1697_s1 + $0x30] sm:$0xff] (!%p291_p9)  ;;  %v414_v15 = vld [vmem:[%s1698_s2 + $0x38] sm:$0xff] (!%p291_p9)  ;;  %v383_v37 = vsub.s32 (!%p291_p9), 0, %v382_v36  ;;  %v387_v39 = vsub.s32 (!%p291_p9), 1, %v382_v36  ;;  %s1342_s26 = smov (!%p291_p9), [#allocation2]  }
  0x12   : > { %v413_v16 = vld [vmem:[%s1698_s2 + $0x30] sm:$0xff] (!%p291_p9)  ;;  %v496_v17 = vld [vmem:[%s1700_s4 + $0x8] sm:$0xff] (!%p291_p9)  ;;  %v495_v18 = vld [vmem:[%s1700_s4] sm:$0xff] (!%p291_p9) }
  0x13   : > { %422 = vperm.xlu1 (!%p291_p9), %1179, %v408_v3   ;;  %347 = vperm.xlu0 (!%p291_p9), %1178, %v333_v4   ;;  %v498_v19 = vld [vmem:[%s1700_s4 + $0x18] sm:$0xff] (!%p291_p9)  ;;  %v497_v20 = vld [vmem:[%s1700_s4 + $0x10] sm:$0xff] (!%p291_p9)  ;;  %v500_v21 = vld [vmem:[%s1700_s4 + $0x28] sm:$0xff] (!%p291_p9) }
  0x14   : > { %v499_v22 = vld [vmem:[%s1700_s4 + $0x20] sm:$0xff] (!%p291_p9)  ;;  %v502_v23 = vld [vmem:[%s1700_s4 + $0x38] sm:$0xff] (!%p291_p9)  ;;  %v501_v24 = vld [vmem:[%s1700_s4 + $0x30] sm:$0xff] (!%p291_p9) }
  0x15   : > { %v706_v25 = vld [vmem:[%s1702_s6 + $0x8] sm:$0xff]  ;;  %v705_v26 = vld [vmem:[%s1702_s6] sm:$0xff]  ;;  %v708_v27 = vld [vmem:[%s1702_s6 + $0x18] sm:$0xff]  ;;  %s1713_s27 = smov (!%p326_p10, %s1065_s27), 3 }
  0x16   : > { %v707_v28 = vld [vmem:[%s1702_s6 + $0x10] sm:$0xff]  ;;  %v710_v30 = vld [vmem:[%s1702_s6 + $0x28] sm:$0xff]  ;;  %v709_v31 = vld [vmem:[%s1702_s6 + $0x20] sm:$0xff]  ;;  %s328_s14 = scalar_lea.vmem %s1696_s0, %s1713_s27  ;;  %s1280_s27 = sshll.u32 %s1342_s26, 4  ;;  %s1281_s27 = int_to_ptr.vmem [resolvable:$false] %s1280_s27 }
  0x17   : > { %357 = vperm.xlu1 %1179, %v335_v5   ;;  %352 = vperm.xlu0 %1178, %v334_v6   ;;  %v712_v32 = vld [vmem:[%s1702_s6 + $0x38] sm:$0xff]  ;;  %v711_v33 = vld [vmem:[%s1702_s6 + $0x30] sm:$0xff]  ;;  %v907_v34 = vld [vmem:[%s1704_s8] sm:$0xff]  ;;  %s1282_s28 = scalar_lea.vmem %s1281_s27, 512 }
  0x18   : > { %v331_v38 = vld [vmem:[%s328_s14] sm:$0x3]  ;;  %s1064_s14 = sshll.u32 %s322_s29, 4 }
  0x19   : > { %v1546_v40 = vrot.slane %v331_v38, %v383_v37  ;;  %v1548_v41 = vrot.slane %v331_v38, %v387_v39  ;;  %s324_s17 = scalar_lea.vmem [#allocation2], %s1064_s14 }
  0x1a   : > { %s1004_s21 = sshll.u32 %s324_s17, 4  ;;  %s1656_s21 = int_to_ptr.vmem [resolvable:$true] %s1004_s21 }
  0x1b   : > { %432 = vperm.xlu1 %1179, %v410_v7   ;;  %427 = vperm.xlu0 %1178, %v409_v8   ;;  %s1276_s25 = scalar_lea.vmem %s1656_s21, 256  ;;  %p1283_p0 = scmp.lt.s32.totalorder %s1656_s21, %s1281_s27 }
  0x1c   : > { %p1277_p11 = scmp.ne.s32.totalorder %s1656_s21, %s1276_s25  ;;  %p1284_p1 = scmp.lt.s32.totalorder %s1282_s28, %s1276_s25 }
  0x1e   : > { %p1278_p12 = pnand %p1277_p11, %p1431_p5  ;;  %p1285_p2 = por %p1284_p1, %p1283_p0 }
  0x1f   : > { %367 = vperm.xlu1 %1179, %v337_v9   ;;  %362 = vperm.xlu0 %1178, %v336_v10  }
  0x20   : > { %p1279_p13 = pneg %p1278_p12 }
  0x22   : > { %p1286_p3 = pnand %p1285_p2, %p1279_p13 }
  0x23   : > { %442 = vperm.xlu1 %1179, %v412_v11   ;;  %437 = vperm.xlu0 %1178, %v411_v12  }
  0x27   : > { %377 = vperm.xlu1 %1179, %v339_v13   ;;  %372 = vperm.xlu0 %1178, %v338_v14  }
  0x2b   : > { %452 = vperm.xlu1 %1179, %v414_v15   ;;  %447 = vperm.xlu0 %1178, %v413_v16  }
  0x2f   : > { %510 = vperm.xlu1 %1179, %v496_v17   ;;  %505 = vperm.xlu0 %1178, %v495_v18  }
  0x33   : > { %520 = vperm.xlu1 %1179, %v498_v19   ;;  %515 = vperm.xlu0 %1178, %v497_v20  }
  0x37   : > { %530 = vperm.xlu1 %1179, %v500_v21   ;;  %525 = vperm.xlu0 %1178, %v499_v22  }
  0x3b   : > { %540 = vperm.xlu1 %1179, %v502_v23   ;;  %535 = vperm.xlu0 %1178, %v501_v24  }
  0x3f   : > { %720 = vperm.xlu1 %1179, %v706_v25   ;;  %715 = vperm.xlu0 %1178, %v705_v26  }
  0x43   : > { %730 = vperm.xlu1 %1179, %v708_v27   ;;  %725 = vperm.xlu0 %1178, %v707_v28  }
  0x47   : > { %740 = vperm.xlu1 %1179, %v710_v30   ;;  %735 = vperm.xlu0 %1178, %v709_v31  }
  0x4b   : > { %750 = vperm.xlu1 %1179, %v712_v32   ;;  %745 = vperm.xlu0 %1178, %v711_v33  }
  0x4f   : > { %910 = vperm.xlu0 %1178, %v907_v34  }
  0x8e   : > { %v418_v42 = vpop.permute.xlu1 %417  ;;  %v343_v43 = vpop.permute.xlu0 %342 }
  0x8f   : > { %v391_v44 = vmul.f32 %v1546_v40, %v343_v43  ;;  %v392_v45 = vmul.f32 %v1548_v41, %v343_v43 }
  0x91   : > { %v455_v46 = vadd.f32 %v418_v42, %v391_v44  ;;  %v456_v51 = vadd.f32 %v418_v42, %v392_v45 }
  0x92   : > { %v423_v47 = vpop.permute.xlu1 %422  ;;  %v348_v48 = vpop.permute.xlu0 %347 }
  0x93   : > { %v393_v49 = vmul.f32 %v1546_v40, %v348_v48  ;;  %v394_v50 = vmul.f32 %v1548_v41, %v348_v48  ;;  %1180 = vtanh.f32 %v455_v46 }
  0x95   : > { %v457_v52 = vadd.f32 %v423_v47, %v393_v49  ;;  %v458_v53 = vadd.f32 %v423_v47, %v394_v50 }
  0x96   : > { %v358_v54 = vpop.permute.xlu1 %357  ;;  %v353_v55 = vpop.permute.xlu0 %352 }
  0x97   : > { %1182 = vtanh.f32 %v457_v52  ;;  %v397_v56 = vmul.f32 %v1546_v40, %v358_v54  ;;  %v398_v57 = vmul.f32 %v1548_v41, %v358_v54  ;;  %v395_v58 = vmul.f32 %v1546_v40, %v353_v55  ;;  %v488_v52 = vld [vmem:[%s1699_s3 + $0x8] sm:$0xff]  ;;  %v490_v54 = vld [vmem:[%s1699_s3 + $0x18] sm:$0xff] }
  0x98   : > { %1184 = vtanh.f32 %v458_v53  ;;  %v396_v59 = vmul.f32 %v1548_v41, %v353_v55  ;;  %v489_v53 = vld [vmem:[%s1699_s3 + $0x10] sm:$0xff]  ;;  %v491_v55 = vld [vmem:[%s1699_s3 + $0x20] sm:$0xff] }
  0x99   : > { %1186 = vtanh.f32 %v456_v51  ;;  %v487_v51 = vld [vmem:[%s1699_s3] sm:$0xff] }
  0x9a   : > { %v433_v60 = vpop.permute.xlu1 %432  ;;  %v428_v61 = vpop.permute.xlu0 %427 }
  0x9b   : > { %v461_v62 = vadd.f32 %v433_v60, %v397_v56  ;;  %v462_v63 = vadd.f32 %v433_v60, %v398_v57  ;;  %v459_v0 = vadd.f32 %v428_v61, %v395_v58  ;;  %v460_v1 = vadd.f32 %v428_v61, %v396_v59  ;;  %v492_v56 = vld [vmem:[%s1699_s3 + $0x28] sm:$0xff]  ;;  %v493_v57 = vld [vmem:[%s1699_s3 + $0x30] sm:$0xff]  ;;  %v494_v58 = vld [vmem:[%s1699_s3 + $0x38] sm:$0xff] }
  0x9d   : > { %1188 = vtanh.f32 %v461_v62  ;;  %v1181_v4 = vpop.eup %1180 }
  0x9e   : > { %1190 = vtanh.f32 %v462_v63  ;;  %v368_v2 = vpop.permute.xlu1 %367  ;;  %v363_v3 = vpop.permute.xlu0 %362 }
  0x9f   : > { %1192 = vtanh.f32 %v459_v0  ;;  %v401_v6 = vmul.f32 %v1546_v40, %v368_v2  ;;  %v402_v7 = vmul.f32 %v1548_v41, %v368_v2  ;;  %v399_v8 = vmul.f32 %v1546_v40, %v363_v3 }
  0xa0   : > { %1194 = vtanh.f32 %v460_v1  ;;  %v400_v10 = vmul.f32 %v1548_v41, %v363_v3 }
  0xa1   : > { %v1183_v5 = vpop.eup %1182 }
  0xa2   : > { %v1185_v9 = vpop.eup %1184  ;;  %v443_v11 = vpop.permute.xlu1 %442  ;;  %v1091_v17 = vpack.c.bf16 %v1183_v5, %v1181_v4 }
  0xa3   : > { %v438_v12 = vpop.permute.xlu0 %437  ;;  %v1187_v13 = vpop.eup %1186  ;;  %v465_v14 = vadd.f32 %v443_v11, %v401_v6  ;;  %v466_v15 = vadd.f32 %v443_v11, %v402_v7 }
  0xa4   : > { %v463_v16 = vadd.f32 %v438_v12, %v399_v8  ;;  %v464_v18 = vadd.f32 %v438_v12, %v400_v10  ;;  %v1089_v19 = vpack.c.bf16 %v1185_v9, %v1187_v13 }
  0xa5   : > { %1196 = vtanh.f32 %v465_v14 }
  0xa6   : > { %1198 = vtanh.f32 %v466_v15  ;;  %1090 = vmatprep.subr.bf16.mxu0 %v1089_v19  ;;  %v378_v20 = vpop.permute.xlu1 %377 }
  0xa7   : > { %v373_v21 = vpop.permute.xlu0 %372  ;;  %v1189_v22 = vpop.eup %1188  ;;  %1200 = vtanh.f32 %v463_v16  ;;  %1092 = vmatpush1.bf16.msra.mxu0 %v1091_v17  ;;  %v405_v25 = vmul.f32 %v1546_v40, %v378_v20  ;;  %v406_v26 = vmul.f32 %v1548_v41, %v378_v20 }
  0xa8   : > { %v1191_v23 = vpop.eup %1190  ;;  %1202 = vtanh.f32 %v464_v18  ;;  %v403_v27 = vmul.f32 %v1546_v40, %v373_v21  ;;  %v404_v30 = vmul.f32 %v1548_v41, %v373_v21 }
  0xa9   : > { %v1193_v24 = vpop.eup %1192 }
  0xaa   : > { %v1195_v28 = vpop.eup %1194  ;;  %v453_v31 = vpop.permute.xlu1 %452  ;;  %v1095_v36 = vpack.c.bf16 %v1189_v22, %v1193_v24 }
  0xab   : > { %v448_v32 = vpop.permute.xlu0 %447  ;;  %v469_v33 = vadd.f32 %v453_v31, %v405_v25  ;;  %v470_v34 = vadd.f32 %v453_v31, %v406_v26  ;;  %v1093_v38 = vpack.c.bf16 %v1191_v23, %v1195_v28 }
  0xac   : > { %v467_v35 = vadd.f32 %v448_v32, %v403_v27  ;;  %v468_v37 = vadd.f32 %v448_v32, %v404_v30 }
  0xad   : > { %1204 = vtanh.f32 %v469_v33  ;;  %1094 = vmatprep.subr.bf16.mxu0 %v1093_v38 }
  0xae   : > { %1206 = vtanh.f32 %v470_v34  ;;  %1096 = vmatpush1.bf16.msra.mxu0 %v1095_v36  ;;  %v511_v0 = vpop.permute.xlu1 %510 }
  0xaf   : > { %v1197_v39 = vpop.eup %1196  ;;  %1208 = vtanh.f32 %v467_v35  ;;  %v506_v59 = vpop.permute.xlu0 %505 }
  0xb0   : > { %v1199_v42 = vpop.eup %1198  ;;  %1210 = vtanh.f32 %v468_v37 }
  0xb1   : > { %v1201_v40 = vpop.eup %1200 }
  0xb2   : > { %v1203_v43 = vpop.eup %1202  ;;  %v1099_v44 = vpack.c.bf16 %v1197_v39, %v1201_v40  ;;  %v521_v10 = vpop.permute.xlu1 %520 }
  0xb3   : > { %v1097_v41 = vpack.c.bf16 %v1199_v42, %v1203_v43  ;;  %v516_v5 = vpop.permute.xlu0 %515 }
  0xb5   : > { %1098 = vmatprep.subr.bf16.mxu0 %v1097_v41 }
  0xb6   : > { %1100 = vmatpush1.bf16.msra.mxu0 %v1099_v44  ;;  %v531_v26 = vpop.permute.xlu1 %530 }
  0xb7   : > { %v1205_v45 = vpop.eup %1204  ;;  %v526_v17 = vpop.permute.xlu0 %525 }
  0xb8   : > { %v1207_v46 = vpop.eup %1206 }
  0xb9   : > { %v1209_v47 = vpop.eup %1208 }
  0xba   : > { %v1211_v48 = vpop.eup %1210  ;;  %v1103_v49 = vpack.c.bf16 %v1205_v45, %v1209_v47  ;;  %v541_v44 = vpop.permute.xlu1 %540 }
  0xbb   : > { %v1101_v50 = vpack.c.bf16 %v1207_v46, %v1211_v48  ;;  %v536_v34 = vpop.permute.xlu0 %535 }
  0xbd   : > { %1102 = vmatprep.subr.bf16.mxu0 %v1101_v50 }
  0xbe   : > { %1104 = vmatpush1.bf16.msra.mxu0 %v1103_v49 }
  0xc1   : > { %1066 = vmatmul.mubr.msk.f32.vlgmr.msra.gmra.mrb[0].mxu0 %vm543_vm0, %v487_v51 }
  0xc2   : > { %638 = vmatprep.mubr.f32.mxu0 %v1341_v29 }
  0xc5   : > { %1067 = vmatmul.mubr.msk.f32.gmra.mrb[2].mxu0 %vm543_vm0, %v488_v52 }
  0xc6   : > { %644 = vmatprep.mubr.f32.mxu0 %v1341_v29 }
  0xc9   : > { %1068 = vmatmul.mubr.msk.f32.gmra.mrb[4].mxu0 %vm543_vm0, %v489_v53 }
  0xca   : > { %650 = vmatprep.mubr.f32.mxu0 %v1341_v29 }
  0xcd   : > { %1069 = vmatmul.mubr.msk.f32.gmra.mrb[6].mxu0 %vm543_vm0, %v490_v54 }
  0xce   : > { %656 = vmatprep.mubr.f32.mxu0 %v1341_v29 }
  0xd1   : > { %1070 = vmatmul.mubr.msk.f32.gmra.mrb[8].mxu0 %vm543_vm0, %v491_v55 }
  0xd2   : > { %662 = vmatprep.mubr.f32.mxu0 %v1341_v29 }
  0xd5   : > { %1071 = vmatmul.mubr.msk.f32.gmra.mrb[10].mxu0 %vm543_vm0, %v492_v56 }
  0xd6   : > { %668 = vmatprep.mubr.f32.mxu0 %v1341_v29 }
  0xd9   : > { %1072 = vmatmul.mubr.msk.f32.gmra.mrb[12].mxu0 %vm543_vm0, %v493_v57 }
  0xda   : > { %674 = vmatprep.mubr.f32.mxu0 %v1341_v29 }
  0xdd   : > { %1073 = vmatmul.mubr.msk.f32.gmra.mrb[14].mxu0 %vm543_vm0, %v494_v58 }
  0xde   : > { %980 = vmatprep.mubr.f32.mxu0 %v1341_v29 }
 0x194   : > { %v634_v60 = vpop.f32.mrb[0].mxu0 }
 0x195   : > { %v635_v61 = vadd.f32 %v634_v60, %v506_v59  ;;  %v636_v62 = vpop.f32.mrb[1].mxu0  ;;  %v697_v60 = vld [vmem:[%s1701_s5] sm:$0xff] }
 0x196   : > { %v637_v63 = vadd.f32 %v636_v62, %v506_v59  ;;  %v699_v62 = vld [vmem:[%s1701_s5 + $0x10] sm:$0xff] }
 0x197   : > { %1212 = vtanh.f32 %v635_v61  ;;  %v698_v61 = vld [vmem:[%s1701_s5 + $0x8] sm:$0xff] }
 0x198   : > { %v640_v1 = vpop.f32.mrb[2].mxu0  ;;  %1214 = vtanh.f32 %v637_v63  ;;  %v700_v63 = vld [vmem:[%s1701_s5 + $0x18] sm:$0xff] }
 0x199   : > { %v641_v2 = vadd.f32 %v640_v1, %v511_v0  ;;  %v642_v3 = vpop.f32.mrb[3].mxu0  ;;  %v702_v1 = vld [vmem:[%s1701_s5 + $0x28] sm:$0xff] }
 0x19a   : > { %v643_v4 = vadd.f32 %v642_v3, %v511_v0  ;;  %v701_v0 = vld [vmem:[%s1701_s5 + $0x20] sm:$0xff]  ;;  %v704_v3 = vld [vmem:[%s1701_s5 + $0x38] sm:$0xff] }
 0x19b   : > { %1216 = vtanh.f32 %v641_v2  ;;  %v703_v2 = vld [vmem:[%s1701_s5 + $0x30] sm:$0xff] }
 0x19c   : > { %1218 = vtanh.f32 %v643_v4  ;;  %v646_v6 = vpop.f32.mrb[4].mxu0  ;;  %v716_v4 = vpop.permute.xlu0 %715 }
 0x19d   : > { %v647_v7 = vadd.f32 %v646_v6, %v516_v5  ;;  %v648_v8 = vpop.f32.mrb[5].mxu0 }
 0x19e   : > { %v649_v9 = vadd.f32 %v648_v8, %v516_v5 }
 0x19f   : > { %1220 = vtanh.f32 %v647_v7 }
 0x1a0   : > { %v652_v11 = vpop.f32.mrb[6].mxu0  ;;  %1222 = vtanh.f32 %v649_v9  ;;  %v721_v9 = vpop.permute.xlu1 %720 }
 0x1a1   : > { %v653_v12 = vadd.f32 %v652_v11, %v521_v10  ;;  %v654_v13 = vpop.f32.mrb[7].mxu0  ;;  %v1213_v15 = vpop.eup %1212 }
 0x1a2   : > { %v655_v14 = vadd.f32 %v654_v13, %v521_v10  ;;  %v1215_v16 = vpop.eup %1214 }
 0x1a3   : > { %1224 = vtanh.f32 %v653_v12 }
 0x1a4   : > { %1226 = vtanh.f32 %v655_v14  ;;  %v658_v18 = vpop.f32.mrb[8].mxu0 }
 0x1a5   : > { %v1217_v19 = vpop.eup %1216  ;;  %v659_v20 = vadd.f32 %v658_v18, %v526_v17  ;;  %v660_v21 = vpop.f32.mrb[9].mxu0 }
 0x1a6   : > { %v1219_v22 = vpop.eup %1218  ;;  %v661_v23 = vadd.f32 %v660_v21, %v526_v17  ;;  %v1107_v24 = vpack.c.bf16 %v1217_v19, %v1213_v15  ;;  %v731_v18 = vpop.permute.xlu1 %730 }
 0x1a7   : > { %v1105_v25 = vpack.c.bf16 %v1219_v22, %v1215_v16  ;;  %1228 = vtanh.f32 %v659_v20 }
 0x1a8   : > { %v664_v27 = vpop.f32.mrb[10].mxu0  ;;  %1230 = vtanh.f32 %v661_v23 }
 0x1a9   : > { %v665_v28 = vadd.f32 %v664_v27, %v531_v26  ;;  %v666_v30 = vpop.f32.mrb[11].mxu0  ;;  %1106 = vmatprep.subr.bf16.mxu1 %v1105_v25  ;;  %v1221_v32 = vpop.eup %1220 }
 0x1aa   : > { %v667_v31 = vadd.f32 %v666_v30, %v531_v26  ;;  %1108 = vmatpush1.bf16.msra.mxu1 %v1107_v24  ;;  %v1223_v33 = vpop.eup %1222 }
 0x1ab   : > { %1232 = vtanh.f32 %v665_v28 }
 0x1ac   : > { %1234 = vtanh.f32 %v667_v31  ;;  %v670_v35 = vpop.f32.mrb[12].mxu0 }
 0x1ad   : > { %v1225_v36 = vpop.eup %1224  ;;  %v671_v37 = vadd.f32 %v670_v35, %v536_v34  ;;  %v672_v38 = vpop.f32.mrb[13].mxu0 }
 0x1ae   : > { %v1227_v39 = vpop.eup %1226  ;;  %v673_v42 = vadd.f32 %v672_v38, %v536_v34  ;;  %v1111_v40 = vpack.c.bf16 %v1225_v36, %v1221_v32  ;;  %v741_v35 = vpop.permute.xlu1 %740 }
 0x1af   : > { %v1109_v43 = vpack.c.bf16 %v1227_v39, %v1223_v33  ;;  %1236 = vtanh.f32 %v671_v37 }
 0x1b0   : > { %v676_v41 = vpop.f32.mrb[14].mxu0  ;;  %1238 = vtanh.f32 %v673_v42 }
 0x1b1   : > { %v677_v45 = vadd.f32 %v676_v41, %v541_v44  ;;  %v678_v46 = vpop.f32.mrb[15].mxu0  ;;  %1110 = vmatprep.subr.bf16.mxu1 %v1109_v43  ;;  %v1229_v48 = vpop.eup %1228 }
 0x1b2   : > { %v679_v47 = vadd.f32 %v678_v46, %v541_v44  ;;  %1112 = vmatpush1.bf16.msra.mxu1 %v1111_v40  ;;  %v1231_v49 = vpop.eup %1230 }
 0x1b3   : > { %1240 = vtanh.f32 %v677_v45 }
 0x1b4   : > { %1242 = vtanh.f32 %v679_v47 }
 0x1b5   : > { %v1233_v50 = vpop.eup %1232 }
 0x1b6   : > { %v1235_v51 = vpop.eup %1234  ;;  %v1115_v52 = vpack.c.bf16 %v1233_v50, %v1229_v48 }
 0x1b7   : > { %v1113_v53 = vpack.c.bf16 %v1235_v51, %v1231_v49  ;;  %v751_v51 = vpop.permute.xlu1 %750 }
 0x1b9   : > { %1114 = vmatprep.subr.bf16.mxu1 %v1113_v53  ;;  %v1237_v54 = vpop.eup %1236 }
 0x1ba   : > { %1116 = vmatpush1.bf16.msra.mxu1 %v1115_v52  ;;  %v1239_v55 = vpop.eup %1238 }
 0x1bd   : > { %v1241_v56 = vpop.eup %1240 }
 0x1be   : > { %v1243_v57 = vpop.eup %1242  ;;  %v1119_v58 = vpack.c.bf16 %v1241_v56, %v1237_v54 }
 0x1bf   : > { %v1117_v59 = vpack.c.bf16 %v1243_v57, %v1239_v55 }
 0x1c1   : > { %1118 = vmatprep.subr.bf16.mxu1 %v1117_v59 }
 0x1c2   : > { %1120 = vmatpush1.bf16.msra.mxu1 %v1119_v58 }
 0x1c5   : > { %1074 = vmatmul.mubr.msk.f32.vlgmr.msra.gmra.mrb[0].mxu1 %vm543_vm0, %v697_v60 }
 0x1c6   : > { %847 = vmatprep.mubr.f32.mxu1 %v1341_v29 }
 0x1c9   : > { %1075 = vmatmul.mubr.msk.f32.gmra.mrb[2].mxu1 %vm543_vm0, %v698_v61 }
 0x1ca   : > { %853 = vmatprep.mubr.f32.mxu1 %v1341_v29 }
 0x1cd   : > { %1076 = vmatmul.mubr.msk.f32.gmra.mrb[4].mxu1 %vm543_vm0, %v699_v62 }
 0x1ce   : > { %859 = vmatprep.mubr.f32.mxu1 %v1341_v29 }
 0x1d1   : > { %1077 = vmatmul.mubr.msk.f32.gmra.mrb[6].mxu1 %vm543_vm0, %v700_v63 }
 0x1d2   : > { %865 = vmatprep.mubr.f32.mxu1 %v1341_v29 }
 0x1d5   : > { %1078 = vmatmul.mubr.msk.f32.gmra.mrb[8].mxu1 %vm543_vm0, %v701_v0 }
 0x1d6   : > { %871 = vmatprep.mubr.f32.mxu1 %v1341_v29 }
 0x1d9   : > { %1079 = vmatmul.mubr.msk.f32.gmra.mrb[10].mxu1 %vm543_vm0, %v702_v1 }
 0x1da   : > { %877 = vmatprep.mubr.f32.mxu1 %v1341_v29 }
 0x1dd   : > { %1080 = vmatmul.mubr.msk.f32.gmra.mrb[12].mxu1 %vm543_vm0, %v703_v2 }
 0x1de   : > { %883 = vmatprep.mubr.f32.mxu1 %v1341_v29  ;;  %v726_v29 = vpop.permute.xlu0 %725 }
 0x1e1   : > { %1081 = vmatmul.mubr.msk.f32.gmra.mrb[14].mxu1 %vm543_vm0, %v704_v3 }
 0x1e2   : > { %v736_v25 = vpop.permute.xlu0 %735 }
 0x1e6   : > { %v746_v43 = vpop.permute.xlu0 %745 }
 0x298   : > { %v843_v5 = vpop.f32.mrb[0].mxu1 }
 0x299   : > { %v844_v6 = vadd.f32 %v843_v5, %v716_v4  ;;  %v845_v7 = vpop.f32.mrb[1].mxu1  ;;  %v911_v5 = vpop.permute.xlu0 %910 }
 0x29a   : > { %v846_v8 = vadd.f32 %v845_v7, %v716_v4  ;;  %v906_v4 = vld [vmem:[%s1703_s7] sm:$0xff] }
 0x29b   : > { %1244 = vtanh.f32 %v844_v6 }
 0x29c   : > { %v849_v10 = vpop.f32.mrb[2].mxu1  ;;  %1246 = vtanh.f32 %v846_v8 }
 0x29d   : > { %v850_v11 = vadd.f32 %v849_v10, %v721_v9  ;;  %v851_v12 = vpop.f32.mrb[3].mxu1 }
 0x29e   : > { %v852_v13 = vadd.f32 %v851_v12, %v721_v9 }
 0x29f   : > { %1248 = vtanh.f32 %v850_v11 }
 0x2a0   : > { %1250 = vtanh.f32 %v852_v13  ;;  %v855_v14 = vpop.f32.mrb[4].mxu1 }
 0x2a1   : > { %v856_v15 = vadd.f32 %v855_v14, %v726_v29  ;;  %v857_v16 = vpop.f32.mrb[5].mxu1 }
 0x2a2   : > { %v858_v17 = vadd.f32 %v857_v16, %v726_v29 }
 0x2a3   : > { %1252 = vtanh.f32 %v856_v15 }
 0x2a4   : > { %v861_v19 = vpop.f32.mrb[6].mxu1  ;;  %1254 = vtanh.f32 %v858_v17 }
 0x2a5   : > { %v862_v20 = vadd.f32 %v861_v19, %v731_v18  ;;  %v863_v21 = vpop.f32.mrb[7].mxu1  ;;  %v1245_v23 = vpop.eup %1244 }
 0x2a6   : > { %v864_v22 = vadd.f32 %v863_v21, %v731_v18  ;;  %v1247_v24 = vpop.eup %1246 }
 0x2a7   : > { %1256 = vtanh.f32 %v862_v20 }
 0x2a8   : > { %1258 = vtanh.f32 %v864_v22  ;;  %v867_v26 = vpop.f32.mrb[8].mxu1 }
 0x2a9   : > { %v1249_v27 = vpop.eup %1248  ;;  %v868_v28 = vadd.f32 %v867_v26, %v736_v25  ;;  %v869_v30 = vpop.f32.mrb[9].mxu1 }
 0x2aa   : > { %v1251_v31 = vpop.eup %1250  ;;  %v870_v32 = vadd.f32 %v869_v30, %v736_v25  ;;  %v1123_v33 = vpack.c.bf16 %v1249_v27, %v1245_v23 }
 0x2ab   : > { %v1121_v34 = vpack.c.bf16 %v1251_v31, %v1247_v24  ;;  %1260 = vtanh.f32 %v868_v28 }
 0x2ac   : > { %v873_v36 = vpop.f32.mrb[10].mxu1  ;;  %1262 = vtanh.f32 %v870_v32 }
 0x2ad   : > { %v874_v37 = vadd.f32 %v873_v36, %v741_v35  ;;  %v875_v38 = vpop.f32.mrb[11].mxu1  ;;  %1122 = vmatprep.subr.bf16.mxu0 %v1121_v34  ;;  %v1253_v42 = vpop.eup %1252 }
 0x2ae   : > { %v876_v39 = vadd.f32 %v875_v38, %v741_v35  ;;  %1124 = vmatpush1.bf16.msra.mxu0 %v1123_v33  ;;  %v1255_v40 = vpop.eup %1254 }
 0x2af   : > { %1264 = vtanh.f32 %v874_v37 }
 0x2b0   : > { %1266 = vtanh.f32 %v876_v39  ;;  %v879_v44 = vpop.f32.mrb[12].mxu1 }
 0x2b1   : > { %v1257_v41 = vpop.eup %1256  ;;  %v880_v45 = vadd.f32 %v879_v44, %v746_v43  ;;  %v881_v46 = vpop.f32.mrb[13].mxu1 }
 0x2b2   : > { %v1259_v47 = vpop.eup %1258  ;;  %v882_v48 = vadd.f32 %v881_v46, %v746_v43  ;;  %v1127_v49 = vpack.c.bf16 %v1257_v41, %v1253_v42 }
 0x2b3   : > { %v1125_v50 = vpack.c.bf16 %v1259_v47, %v1255_v40  ;;  %1268 = vtanh.f32 %v880_v45 }
 0x2b4   : > { %v885_v52 = vpop.f32.mrb[14].mxu1  ;;  %1270 = vtanh.f32 %v882_v48 }
 0x2b5   : > { %v886_v53 = vadd.f32 %v885_v52, %v751_v51  ;;  %v887_v54 = vpop.f32.mrb[15].mxu1  ;;  %1126 = vmatprep.subr.bf16.mxu0 %v1125_v50  ;;  %v1261_v56 = vpop.eup %1260 }
 0x2b6   : > { %v888_v55 = vadd.f32 %v887_v54, %v751_v51  ;;  %1128 = vmatpush1.bf16.msra.mxu0 %v1127_v49  ;;  %v1263_v57 = vpop.eup %1262 }
 0x2b7   : > { %1272 = vtanh.f32 %v886_v53 }
 0x2b8   : > { %1274 = vtanh.f32 %v888_v55 }
 0x2b9   : > { %v1265_v58 = vpop.eup %1264 }
 0x2ba   : > { %v1267_v59 = vpop.eup %1266  ;;  %v1131_v60 = vpack.c.bf16 %v1265_v58, %v1261_v56 }
 0x2bb   : > { %v1129_v61 = vpack.c.bf16 %v1267_v59, %v1263_v57 }
 0x2bd   : > { %1130 = vmatprep.subr.bf16.mxu0 %v1129_v61  ;;  %v1269_v62 = vpop.eup %1268 }
 0x2be   : > { %1132 = vmatpush1.bf16.msra.mxu0 %v1131_v60  ;;  %v1271_v63 = vpop.eup %1270 }
 0x2c1   : > { %v1273_v0 = vpop.eup %1272 }
 0x2c2   : > { %v1275_v1 = vpop.eup %1274  ;;  %v1135_v2 = vpack.c.bf16 %v1273_v0, %v1269_v62 }
 0x2c3   : > { %v1133_v3 = vpack.c.bf16 %v1275_v1, %v1271_v63 }
 0x2c5   : > { %1134 = vmatprep.subr.bf16.mxu0 %v1133_v3 }
 0x2c6   : > { %1136 = vmatpush1.bf16.msra.mxu0 %v1135_v2 }
 0x2c9   : > { %1082 = vmatmul.mubr.msk.f32.vlgmr.msra.gmra.mrb[16].mxu0 %vm543_vm0, %v906_v4 }
 0x39c   : > { %v982_v6 = vpop.f32.mrb[16].mxu0 }
 0x39d   : > { %v983_v7 = vadd.f32 %v982_v6, %v911_v5  ;;  %v984_v8 = vpop.f32.mrb[17].mxu0 }
 0x39e   : > { %v985_v9 = vadd.f32 %v984_v8, %v911_v5 }
 0x39f   : > { %987 = vst [vmem:[%s324_s17] sm:$0xff] %v983_v7 }
 0x3a0   : > { %988 = vst [vmem:[%s324_s17 + $0x8] sm:$0xff] %v985_v9 }
 0x3a1   : > { %1289 = shalt.err (!%p1286_p3)
}
 0x3a2   : > { %s1290_s29 = scalar_lea.hbm %s1654_s24, 256  ;;  %s1294_s17 = scalar_lea.hbm %s1705_s9, 512 }
 0x3a3   : > { %p1291_p4 = scmp.ne.s32.totalorder %s1654_s24, %s1290_s29  ;;  %p1295_p9 = scmp.lt.u32.totalorder %s1654_s24, %s1705_s9 }
 0x3a4   : > { %p1296_p10 = scmp.lt.u32.totalorder %s1294_s17, %s1290_s29  ;;  %p1298_p12 = scmp.lt.u32.totalorder %s1290_s29, %s1654_s24 }
 0x3a5   : > { %p1292_p7 = pnand %p1291_p4, %p1431_p5 }
 0x3a6   : > { %p1297_p11 = por %p1296_p10, %p1295_p9 }
 0x3a7   : > { %p1293_p8 = pneg %p1292_p7 }
 0x3a8   : > { %p1299_p13 = por %p1298_p12, %p1297_p11 }
 0x3aa   : > { %p1300_p0 = pnand %p1299_p13, %p1293_p8 }
 0x3ac   : > { %1303 = shalt.err (!%p1300_p0)
}
 0x3ad   : > { %1137 = dma.vmem_to_hbm [thread:$0]  (%p1431_p5), %s1656_s21, 256, %s1654_s24, %s990_s13  }
 0x3ae PF: > { %p1143_p1 = scmp.ge.s32.totalorder %s1338_s12, 2  ;;  %s1016_s25 = sand.u32 1, %s1326_s30  }
 0x3af   : > { %s1017_s26 = scalar_lea.sflag [#allocation3], %s1016_s25 }
 0x3b0   : > { %p1140_p2 = pnand %p1143_p1, %p1435_p6 }
 0x3b2   : > { %1321 = dma.done.wait (!%p1140_p2), %s1017_s26, 256  }
 0x3b3   : > { %1323 = vsyncadd (!%p1140_p2), %s1017_s26, 4294967040  ;;  %p19_p3 = scmp.ge.s32.totalorder %s1418_s15, 4   ;;  %s1708_s30 = smov %s1330_s10 }
 0x3b4   : > { %s1709_s10 = smov %s1334_s11  ;;  %s1710_s11 = smov %s1429_s18 }
 0x3b5   : > { %s1711_s12 = smov %s1418_s15  ;;  %21 = sbr.rel (!%p19_p3) target bundleno = 3 (0x3), region = 91 }
 0x3bc   :  { %1022 = vsyncpa [#allocation3], 1 }
 0x3bd   :  { %1024 = vsyncpa [#allocation3 + $0x1], 1 }

</bundles_post_ra>
